<compile_context>
chip_gen: v5e
topology: v5e:2x2
jax: 0.10.0
libtpu: 0.0.40
codegen_flags: <defaults>
</compile_context>

<pallas_src>
import functools

import jax
import jax.numpy as jnp
from jax.experimental import pallas as pl
from jax.experimental.pallas import tpu as pltpu

# weight/bias stacking order (weights stored as (in, out), i.e. PyTorch W.T):
#   0: fc_q    1: fc_k    2: fc_v
#   3: attn Wq 4: attn Wk 5: attn Wv
#   6: attn out_proj      7: fc_o
NUM_MATS = 8


def _round_up(x, m):
    return ((x + m - 1) // m) * m


def nlp_kernel(x_ref, wbig_ref, bbig_ref, exp_ref, wa_ref, ba_ref,
               wf_ref, bf_ref, o_ref, *, dp, sp, n_valid):
    bt, np_, d = x_ref.shape
    # one big MXU M-dim per grid step; merge keeps the minor dim -> free
    x = x_ref[...].reshape(bt * np_, d)

    # single fused streaming matmul: [ fc_v∘Wv | pad | per-head scores | pad ]
    big = (jnp.dot(x, wbig_ref[...], preferred_element_type=jnp.float32)
           + bbig_ref[...])                       # (bt*np_, dp+sp) f32
    v2 = big[:, :dp]                              # fused fc_v∘attn-Wv (zero-padded lanes)
    s3 = big[:, dp:].reshape(bt, np_, sp)         # q2/scale-folded per-head scores

    # mask padded sequence rows (only when N was padded to a multiple of 8)
    if n_valid != np_:
        row = jax.lax.broadcasted_iota(jnp.int32, (bt, np_, sp), 1)
        s3 = jnp.where(row < n_valid, s3, -1e30)

    # head-batched softmax over the sequence axis (no per-head slicing/concat)
    m = jnp.max(s3, axis=1, keepdims=True)        # (bt, 1, sp)
    p = jnp.exp(s3 - m)                           # (bt, np_, sp)
    denom = jnp.sum(p, axis=1, keepdims=True)
    p = p * pl.reciprocal(denom, approx=True)     # EUP reciprocal

    # expand per-head probs across that head's lanes (exact 0/1 matmul, f32),
    # then weighted sum over the sequence (sublane reduce)
    p_full = jnp.dot(p.reshape(bt * np_, sp), exp_ref[...],
                     preferred_element_type=jnp.float32)     # (bt*np_, dp)
    ctx = jnp.sum((p_full * v2).reshape(bt, np_, dp), axis=1)  # (bt, dp)

    # attention out-projection (q1 folded into its bias), fc_o + relu residual
    a = (jnp.dot(ctx.astype(wa_ref.dtype), wa_ref[...],
                 preferred_element_type=jnp.float32) + ba_ref[...])   # (bt, D)
    o = a + jax.nn.relu(
        jnp.dot(a.astype(wf_ref.dtype), wf_ref[...],
                preferred_element_type=jnp.float32) + bf_ref[...])
    o_ref[...] = o.reshape(o_ref.shape).astype(o_ref.dtype)


def _pick_batch_tile(B, N, D, itemsize, target_bytes=2 << 20, min_grid=2):
    """Largest bt with bt | B and bt % 8 == 0 (layout-legal output block) such
    that the per-step X tile is ~target_bytes, keeping >= min_grid grid steps
    (both TensorCores on v7x) when possible.  Falls back to bt = B (a
    full-array block, always legal) if B has no multiple-of-8 divisor."""
    row_bytes = max(1, N * D * itemsize)
    cap = max(1, target_bytes // row_bytes)
    if B // min_grid >= 8:
        cap = min(cap, B // min_grid)
    legal = [d for d in range(8, B + 1, 8) if B % d == 0]
    if not legal:
        return B
    under = [d for d in legal if d <= cap]
    return max(under) if under else min(legal)


def _padded_vmem_bytes(shape, itemsize):
    """VMEM footprint of one buffer of `shape`, accounting for (8,128) tiling."""
    lead = 1
    for d in shape[:-2]:
        lead *= d
    s = shape[-2] if len(shape) >= 2 else 1
    l = shape[-1]
    return lead * _round_up(s, 8) * _round_up(l, 128) * itemsize


def nlp_prepare(S, weights, biases, num_heads, matmul_dtype=jnp.bfloat16):
    """Fold batch-invariant and back-to-back linears into compact kernel params."""
    D = S.shape[-1]
    H = num_heads
    hd = D // H
    Dp = _round_up(D, 128)
    Sp = _round_up(max(H, 1), 128)
    w = weights.astype(jnp.float32)
    b = biases.astype(jnp.float32)

    # batch-invariant query path (depends only on the learned seed S)
    q1 = S.astype(jnp.float32) @ w[0] + b[0][None]           # (1, D)
    q2 = q1 @ w[3] + b[3][None]                              # (1, D)

    # fold fc_k∘attn-Wk and fc_v∘attn-Wv
    wk = w[1] @ w[4]
    bk = b[1] @ w[4] + b[4]                                  # (D,)
    wv = w[2] @ w[5]
    bv = b[2] @ w[5] + b[5]                                  # (D,)

    # fold q2 and the 1/sqrt(hd) scale into a (D, H) per-head score projection
    qs = q2[0] * (1.0 / float(hd) ** 0.5)                    # (D,)
    w_score = (wk * qs[None, :]).reshape(D, H, hd).sum(-1)   # (D, H)
    b_score = (bk * qs).reshape(H, hd).sum(-1)               # (H,)

    # ONE fused X matmul: [ Wv (D cols) | 0 pad to Dp | W_score (H cols) | 0 pad to Sp ]
    w_big = jnp.zeros((D, Dp + Sp), jnp.float32)
    w_big = w_big.at[:, :D].set(wv).at[:, Dp:Dp + H].set(w_score)
    b_big = jnp.zeros((Dp + Sp,), jnp.float32)
    b_big = b_big.at[:D].set(bv).at[Dp:Dp + H].set(b_score)

    # exact 0/1 expansion matrix: head h -> its hd lanes (padded to (Sp, Dp))
    expand = jnp.zeros((Sp, Dp), jnp.float32)
    expand = expand.at[:H, :D].set(
        jnp.repeat(jnp.eye(H, dtype=jnp.float32), hd, axis=1))

    # attn out-projection padded to Dp rows; q1 residual folded into its bias
    w_attn = jnp.zeros((Dp, D), jnp.float32).at[:D, :].set(w[6])
    b_attn = b[6] + q1[0]                                    # (D,)

    return dict(
        w_big=w_big.astype(matmul_dtype),
        b_big=b_big[None].astype(jnp.float32),               # (1, Dp+Sp)
        expand=expand,                                       # (Sp, Dp) f32 (exact)
        w_attn=w_attn.astype(matmul_dtype),
        b_attn=b_attn[None].astype(jnp.float32),             # (1, D)
        w_fco=w[7].astype(matmul_dtype),
        b_fco=b[7][None].astype(jnp.float32),                # (1, D)
    )


def nlp_forward(x, S, weights, biases, num_heads, matmul_dtype=jnp.bfloat16,
                x_buffers=2, target_tile_bytes=2 << 20):
    """x: (B, N, D); S: (1, D); weights: (8, D, D); biases: (8, D).

    Returns (O of shape (B, 1, D), None) — the default (return_attention=False)
    forward of NLP.  `matmul_dtype=bf16` (default) halves X HBM traffic on all
    generations; `x_buffers` can be raised to 3-4 on v7x once VMEM allows.
    """
    B, N, D = x.shape
    H = num_heads
    assert D % H == 0

    Dp = _round_up(D, 128)
    Sp = _round_up(max(H, 1), 128)
    Np = _round_up(N, 8)

    params = nlp_prepare(S, weights, biases, num_heads, matmul_dtype)

    x_in = x.astype(matmul_dtype)
    if Np != N:
        x_in = jnp.pad(x_in, ((0, 0), (0, Np - N), (0, 0)))

    x_itemsize = jnp.dtype(matmul_dtype).itemsize
    bt = _pick_batch_tile(B, Np, D, x_itemsize, target_tile_bytes, min_grid=2)
    grid = (B // bt,)

    # --- explicit VMEM budget (constants + pipelined X tile + output tile) ---
    w_it = jnp.dtype(matmul_dtype).itemsize
    const_shapes = [((D, Dp + Sp), w_it), ((1, Dp + Sp), 4), ((Sp, Dp), 4),
                    ((Dp, D), w_it), ((1, D), 4), ((D, D), w_it), ((1, D), 4)]
    const_bytes = sum(_padded_vmem_bytes(s, it) for s, it in const_shapes)
    single_buffer_consts = (2 * const_bytes > (8 << 20))     # large-D: don't double-buffer
    const_buf = 1 if single_buffer_consts else 2
    need = (x_buffers * _padded_vmem_bytes((bt, Np, D), x_itemsize)
            + const_buf * const_bytes
            + 2 * _padded_vmem_bytes((bt, D), 4))
    vmem_limit = int(min(64 << 20, max(32 << 20, 2 * need + (4 << 20))))

    def _const(shape):
        if single_buffer_consts:
            return pl.BlockSpec(shape, lambda i: (0,) * len(shape),
                                pipeline_mode=pl.Buffered(1))
        return pl.BlockSpec(shape, lambda i: (0,) * len(shape))

    x_spec_kwargs = {}
    if x_buffers != 2:
        x_spec_kwargs["pipeline_mode"] = pl.Buffered(x_buffers)
    x_spec = pl.BlockSpec((bt, Np, D), lambda i: (i, 0, 0), **x_spec_kwargs)

    kern = functools.partial(nlp_kernel, dp=Dp, sp=Sp, n_valid=N)

    out = pl.pallas_call(
        kern,
        out_shape=jax.ShapeDtypeStruct((B, D), jnp.float32),
        grid=grid,
        in_specs=[
            x_spec,                          # X tile (only streamed operand)
            _const((D, Dp + Sp)),            # fused [Wv | score] projection
            _const((1, Dp + Sp)),            # its bias
            _const((Sp, Dp)),                # head->lane expansion (0/1, f32)
            _const((Dp, D)),                 # attn out_proj W (row-padded)
            _const((1, D)),                  # attn out_proj b (+ q1 folded)
            _const((D, D)),                  # fc_o W
            _const((1, D)),                  # fc_o b
        ],
        out_specs=pl.BlockSpec((bt, D), lambda i: (i, 0)),
        compiler_params=pltpu.CompilerParams(
            dimension_semantics=("parallel",),
            vmem_limit_bytes=vmem_limit),
    )(x_in, params["w_big"], params["b_big"], params["expand"],
      params["w_attn"], params["b_attn"], params["w_fco"], params["b_fco"])

    # return_attention=False path: attention is None
    return out.reshape(B, 1, D), None


def nlp_reference(x, S, weights, biases, num_heads):
    """Pure-JAX reference mirroring the PyTorch module (f32)."""
    B, N, D = x.shape
    hd = D // num_heads

    def lin(v, i):
        return v @ weights[i] + biases[i]

    s = jnp.broadcast_to(S[None], (B, 1, D))
    q1 = lin(s, 0); k1 = lin(x, 1); v1 = lin(x, 2)
    q2 = lin(q1, 3); k2 = lin(k1, 4); v2 = lin(v1, 5)
    q2h = q2.reshape(B, 1, num_heads, hd).transpose(0, 2, 1, 3)
    k2h = k2.reshape(B, N, num_heads, hd).transpose(0, 2, 1, 3)
    v2h = v2.reshape(B, N, num_heads, hd).transpose(0, 2, 1, 3)
    sc = jnp.einsum("bhqd,bhkd->bhqk", q2h, k2h) / jnp.sqrt(float(hd))
    pr = jax.nn.softmax(sc, axis=-1)
    ctx = jnp.einsum("bhqk,bhkd->bhqd", pr, v2h).transpose(0, 2, 1, 3).reshape(B, 1, D)
    a = lin(ctx, 6)
    o = q1 + a
    o = o + jax.nn.relu(lin(o, 7))
    return o


if __name__ == "__main__":
    root_key = jax.random.PRNGKey(0)

    def run_case(case_idx, B, N, D, num_heads):
        key = jax.random.fold_in(root_key, case_idx)
        k_x, k_s, k_w, k_b = jax.random.split(key, 4)

        x = jax.random.normal(k_x, (B, N, D), dtype=jnp.float32)
        bound_s = (6.0 / (1 + D)) ** 0.5
        S = jax.random.uniform(k_s, (1, D), jnp.float32, -bound_s, bound_s)
        bound_w = (1.0 / D) ** 0.5
        weights = jax.random.uniform(
            k_w, (NUM_MATS, D, D), jnp.float32, -bound_w, bound_w)
        biases = jax.random.uniform(
            k_b, (NUM_MATS, D), jnp.float32, -bound_w, bound_w)

        ref = nlp_reference(x, S, weights, biases, num_heads)

        # f32 MXU-input path — tight tolerance
        out_f32, attn = nlp_forward(x, S, weights, biases, num_heads,
                                    matmul_dtype=jnp.float32)
        out_f32 = jax.block_until_ready(out_f32)
        assert out_f32.shape == (B, 1, D)
        assert attn is None
        assert jnp.allclose(out_f32, ref, atol=2e-2, rtol=2e-2), \
            f"f32 mismatch vs reference (case {case_idx})"

        # default bf16 MXU-input path (all generations), f32 accumulation
        out_bf16, _ = nlp_forward(x, S, weights, biases, num_heads)
        out_bf16 = jax.block_until_ready(out_bf16)
        assert jnp.allclose(out_bf16, ref, atol=1e-1, rtol=1e-1), \
            f"bf16 mismatch vs reference (case {case_idx})"

    # aligned N, multi-step grid (megacore-friendly)
    run_case(0, B=16, N=8, D=32, num_heads=4)
    # non-multiple-of-8 N -> padded rows + masked softmax path
    run_case(1, B=24, N=12, D=32, num_heads=4)

    # TODO(synk): return_attention=True branch (summed averaged attention
    # weights) is not implemented; default forward path returns attention=None.
    print("KERNEL_OK")
</pallas_src>

<mosaic_0001>
module attributes {stable_mosaic.version = 11 : i64} {
  func.func @nlp_kernel(%arg0: i32, %arg1: memref<8x8x32xf32, #tpu.memory_space<vmem>>, %arg2: memref<32x256xf32, #tpu.memory_space<vmem>>, %arg3: memref<1x256xf32, #tpu.memory_space<vmem>>, %arg4: memref<128x128xf32, #tpu.memory_space<vmem>>, %arg5: memref<128x32xf32, #tpu.memory_space<vmem>>, %arg6: memref<1x32xf32, #tpu.memory_space<vmem>>, %arg7: memref<32x32xf32, #tpu.memory_space<vmem>>, %arg8: memref<1x32xf32, #tpu.memory_space<vmem>>, %arg9: memref<8x32xf32, #tpu.memory_space<vmem>>) attributes {dimension_semantics = [#tpu.dimension_semantics<parallel>], iteration_bounds = array<i64: 2>, scalar_prefetch = 0 : i64, scratch_operands = 0 : i64, tpu.core_type = #tpu.core_type<tc>, window_params = [{transform_indices = @transform_0, window_bounds = array<i64: 8, 8, 32>}, {pipeline_mode = #tpu.pipeline_mode<synchronous>, transform_indices = @transform_1, window_bounds = array<i64: 32, 256>}, {pipeline_mode = #tpu.pipeline_mode<synchronous>, transform_indices = @transform_2, window_bounds = array<i64: 1, 256>}, {pipeline_mode = #tpu.pipeline_mode<synchronous>, transform_indices = @transform_3, window_bounds = array<i64: 128, 128>}, {pipeline_mode = #tpu.pipeline_mode<synchronous>, transform_indices = @transform_4, window_bounds = array<i64: 128, 32>}, {pipeline_mode = #tpu.pipeline_mode<synchronous>, transform_indices = @transform_5, window_bounds = array<i64: 1, 32>}, {pipeline_mode = #tpu.pipeline_mode<synchronous>, transform_indices = @transform_6, window_bounds = array<i64: 32, 32>}, {pipeline_mode = #tpu.pipeline_mode<synchronous>, transform_indices = @transform_7, window_bounds = array<i64: 1, 32>}, {transform_indices = @transform_8, window_bounds = array<i64: 8, 32>}]} {
    %c0 = arith.constant 0 : index
    %c0_0 = arith.constant 0 : index
    %c0_1 = arith.constant 0 : index
    %0 = vector.load %arg1[%c0, %c0_0, %c0_1] : memref<8x8x32xf32, #tpu.memory_space<vmem>>, vector<8x8x32xf32>
    %1 = vector.shape_cast %0 : vector<8x8x32xf32> to vector<64x32xf32>
    %c0_2 = arith.constant 0 : index
    %c0_3 = arith.constant 0 : index
    %2 = vector.load %arg2[%c0_2, %c0_3] : memref<32x256xf32, #tpu.memory_space<vmem>>, vector<32x256xf32>
    %cst = arith.constant dense<0.000000e+00> : vector<64x256xf32>
    %3 = tpu.matmul %1, %2, %cst {dimension_numbers = #tpu.dot_dimension_numbers<[1], [0], [0], [1], [0, 0, 1, 1], [], []>} : vector<64x32xf32>, vector<32x256xf32>, vector<64x256xf32> -> vector<64x256xf32>
    %c0_4 = arith.constant 0 : index
    %c0_5 = arith.constant 0 : index
    %4 = vector.load %arg3[%c0_4, %c0_5] : memref<1x256xf32, #tpu.memory_space<vmem>>, vector<1x256xf32>
    %5 = vector.broadcast %4 : vector<1x256xf32> to vector<64x256xf32>
    %6 = arith.addf %3, %5 : vector<64x256xf32>
    %7 = vector.extract_strided_slice %6 {offsets = [0, 0], sizes = [64, 128], strides = [1, 1]} : vector<64x256xf32> to vector<64x128xf32>
    %8 = vector.extract_strided_slice %6 {offsets = [0, 128], sizes = [64, 128], strides = [1, 1]} : vector<64x256xf32> to vector<64x128xf32>
    %9 = vector.shape_cast %8 : vector<64x128xf32> to vector<8x8x128xf32>
    %cst_6 = arith.constant dense<0xFF800000> : vector<8x128xf32>
    %10 = vector.multi_reduction <maximumf>, %9, %cst_6 [1] : vector<8x8x128xf32> to vector<8x128xf32>
    %11 = vector.shape_cast %10 : vector<8x128xf32> to vector<8x1x128xf32>
    %12 = vector.broadcast %11 : vector<8x1x128xf32> to vector<8x8x128xf32>
    %13 = arith.subf %9, %12 : vector<8x8x128xf32>
    %14 = math.exp %13 : vector<8x8x128xf32>
    %cst_7 = arith.constant dense<0.000000e+00> : vector<8x128xf32>
    %15 = vector.multi_reduction <add>, %14, %cst_7 [1] : vector<8x8x128xf32> to vector<8x128xf32>
    %16 = vector.shape_cast %15 : vector<8x128xf32> to vector<8x1x128xf32>
    %17 = tpu.reciprocal %16 {approx = true} : vector<8x1x128xf32> -> vector<8x1x128xf32>
    %18 = vector.broadcast %17 : vector<8x1x128xf32> to vector<8x8x128xf32>
    %19 = arith.mulf %14, %18 : vector<8x8x128xf32>
    %20 = vector.shape_cast %19 : vector<8x8x128xf32> to vector<64x128xf32>
    %c0_8 = arith.constant 0 : index
    %c0_9 = arith.constant 0 : index
    %21 = vector.load %arg4[%c0_8, %c0_9] : memref<128x128xf32, #tpu.memory_space<vmem>>, vector<128x128xf32>
    %cst_10 = arith.constant dense<0.000000e+00> : vector<64x128xf32>
    %22 = tpu.matmul %20, %21, %cst_10 {dimension_numbers = #tpu.dot_dimension_numbers<[1], [0], [0], [1], [0, 0, 1, 1], [], []>} : vector<64x128xf32>, vector<128x128xf32>, vector<64x128xf32> -> vector<64x128xf32>
    %23 = arith.mulf %22, %7 : vector<64x128xf32>
    %24 = vector.shape_cast %23 : vector<64x128xf32> to vector<8x8x128xf32>
    %cst_11 = arith.constant dense<0.000000e+00> : vector<8x128xf32>
    %25 = vector.multi_reduction <add>, %24, %cst_11 [1] : vector<8x8x128xf32> to vector<8x128xf32>
    %c0_12 = arith.constant 0 : index
    %c0_13 = arith.constant 0 : index
    %26 = vector.load %arg5[%c0_12, %c0_13] : memref<128x32xf32, #tpu.memory_space<vmem>>, vector<128x32xf32>
    %cst_14 = arith.constant dense<0.000000e+00> : vector<8x32xf32>
    %27 = tpu.matmul %25, %26, %cst_14 {dimension_numbers = #tpu.dot_dimension_numbers<[1], [0], [0], [1], [0, 0, 1, 1], [], []>} : vector<8x128xf32>, vector<128x32xf32>, vector<8x32xf32> -> vector<8x32xf32>
    %c0_15 = arith.constant 0 : index
    %c0_16 = arith.constant 0 : index
    %28 = vector.load %arg6[%c0_15, %c0_16] : memref<1x32xf32, #tpu.memory_space<vmem>>, vector<1x32xf32>
    %29 = vector.broadcast %28 : vector<1x32xf32> to vector<8x32xf32>
    %30 = arith.addf %27, %29 : vector<8x32xf32>
    %c0_17 = arith.constant 0 : index
    %c0_18 = arith.constant 0 : index
    %31 = vector.load %arg7[%c0_17, %c0_18] : memref<32x32xf32, #tpu.memory_space<vmem>>, vector<32x32xf32>
    %cst_19 = arith.constant dense<0.000000e+00> : vector<8x32xf32>
    %32 = tpu.matmul %30, %31, %cst_19 {dimension_numbers = #tpu.dot_dimension_numbers<[1], [0], [0], [1], [0, 0, 1, 1], [], []>} : vector<8x32xf32>, vector<32x32xf32>, vector<8x32xf32> -> vector<8x32xf32>
    %c0_20 = arith.constant 0 : index
    %c0_21 = arith.constant 0 : index
    %33 = vector.load %arg8[%c0_20, %c0_21] : memref<1x32xf32, #tpu.memory_space<vmem>>, vector<1x32xf32>
    %34 = vector.broadcast %33 : vector<1x32xf32> to vector<8x32xf32>
    %35 = arith.addf %32, %34 : vector<8x32xf32>
    %cst_22 = arith.constant 0.000000e+00 : f32
    %36 = vector.broadcast %cst_22 : f32 to vector<8x32xf32>
    %37 = arith.maximumf %35, %36 : vector<8x32xf32>
    %38 = arith.addf %30, %37 : vector<8x32xf32>
    %c0_23 = arith.constant 0 : index
    %c0_24 = arith.constant 0 : index
    %39 = vector.load %arg9[%c0_23, %c0_24] : memref<8x32xf32, #tpu.memory_space<vmem>>, vector<8x32xf32>
    tpu.vector_store %arg9[%c0_23, %c0_24], %38 {strides = array<i32>} : memref<8x32xf32, #tpu.memory_space<vmem>>, vector<8x32xf32>,
    return
  }
  func.func @transform_0(%arg0: i32) -> (i32, i32, i32) {
    %c0_i32 = arith.constant 0 : i32
    %c0_i32_0 = arith.constant 0 : i32
    %c0_i32_1 = arith.constant 0 : i32
    return %arg0, %c0_i32, %c0_i32_0 : i32, i32, i32
  }
  func.func @transform_1(%arg0: i32) -> (i32, i32) {
    %c0_i32 = arith.constant 0 : i32
    %c0_i32_0 = arith.constant 0 : i32
    %c0_i32_1 = arith.constant 0 : i32
    return %c0_i32, %c0_i32_0 : i32, i32
  }
  func.func @transform_2(%arg0: i32) -> (i32, i32) {
    %c0_i32 = arith.constant 0 : i32
    %c0_i32_0 = arith.constant 0 : i32
    %c0_i32_1 = arith.constant 0 : i32
    return %c0_i32, %c0_i32_0 : i32, i32
  }
  func.func @transform_3(%arg0: i32) -> (i32, i32) {
    %c0_i32 = arith.constant 0 : i32
    %c0_i32_0 = arith.constant 0 : i32
    %c0_i32_1 = arith.constant 0 : i32
    return %c0_i32, %c0_i32_0 : i32, i32
  }
  func.func @transform_4(%arg0: i32) -> (i32, i32) {
    %c0_i32 = arith.constant 0 : i32
    %c0_i32_0 = arith.constant 0 : i32
    %c0_i32_1 = arith.constant 0 : i32
    return %c0_i32, %c0_i32_0 : i32, i32
  }
  func.func @transform_5(%arg0: i32) -> (i32, i32) {
    %c0_i32 = arith.constant 0 : i32
    %c0_i32_0 = arith.constant 0 : i32
    %c0_i32_1 = arith.constant 0 : i32
    return %c0_i32, %c0_i32_0 : i32, i32
  }
  func.func @transform_6(%arg0: i32) -> (i32, i32) {
    %c0_i32 = arith.constant 0 : i32
    %c0_i32_0 = arith.constant 0 : i32
    %c0_i32_1 = arith.constant 0 : i32
    return %c0_i32, %c0_i32_0 : i32, i32
  }
  func.func @transform_7(%arg0: i32) -> (i32, i32) {
    %c0_i32 = arith.constant 0 : i32
    %c0_i32_0 = arith.constant 0 : i32
    %c0_i32_1 = arith.constant 0 : i32
    return %c0_i32, %c0_i32_0 : i32, i32
  }
  func.func @transform_8(%arg0: i32) -> (i32, i32) {
    %c0_i32 = arith.constant 0 : i32
    %c0_i32_0 = arith.constant 0 : i32
    return %arg0, %c0_i32 : i32, i32
  }
}

</mosaic_0001>

<bundles_post_ra>
// kernel: tpu_custom_call.1
= control target key start
LH: loop header
LB: loop body
LE: loop exit
PB: predicated region body
PF: predicated region fallthrough
CT: control target
= control target key end

     0   :  { %s1547_s0 = inlined_call_operand.vmem [shape: f32[16,8,32], index: 0, kind: input, shape index: {}]   ;;  %s1548_s1 = inlined_call_operand.hbm [shape: f32[32,256], index: 1, kind: input, shape index: {}]   ;;  %s1549_s2 = inlined_call_operand.hbm [shape: f32[1,256], index: 2, kind: input, shape index: {}]   ;;  %s1550_s3 = inlined_call_operand.hbm [shape: f32[128,128], index: 3, kind: input, shape index: {}]   ;;  %s1551_s4 = inlined_call_operand.vmem [shape: f32[128,32], index: 4, kind: input, shape index: {}]   ;;  %s1552_s5 = inlined_call_operand.vmem [shape: f32[1,32], index: 5, kind: input, shape index: {}]   ;;  %s1553_s6 = inlined_call_operand.vmem [shape: f32[32,32], index: 6, kind: input, shape index: {}]   ;;  %s1554_s7 = inlined_call_operand.vmem [shape: f32[1,32], index: 7, kind: input, shape index: {}]   ;;  %s1555_s8 = inlined_call_operand.hbm [shape: f32[16,32], index: 8, kind: output, shape index: {}]  }
   0x1   :  { %1556 = sst [smem:[#allocation13_spill]] %s1548_s1 }
   0x2   :  { %1557 = sst [smem:[#allocation14_spill]] %s1549_s2 }
   0x3   :  { %13 = vsyncpa [#allocation3], 0 }
   0x4   :  { %14 = vsyncpa [#allocation6], 0 }
   0x5   :  { %15 = vsyncpa [#allocation4], 0 }
   0x6   :  { %17 = vsyncpa [#allocation4 + $0x1], 0  ;;  %s1291_s27 = smov 0   ;;  %s1293_s28 = smov 0  }
   0x7   :  { %s1295_s29 = smov 0   ;;  %s1297_s30 = smov 0  }
   0x8 LB: > { %s1312_s9 = sadd.s32 4294967295, %s1237_s30   ;;  %s935_s10 = sadd.s32 4294967294, %s1237_s30   ;;  %s1237_s30 = sphi %s1297_s30, %s1569_s30   ;;  %s1233_s29 = sphi %s1295_s29, %s1568_s29   ;;  %s1229_s28 = sphi %s1293_s28, %s1567_s28   ;;  %s1225_s27 = sphi %s1291_s27, %s1566_s27  }
   0x9   : > { %s1316_s11 = sadd.s32 1, %s1237_s30   ;;  %s203_s12 = sadd.s32 1, %s1233_s29 }
   0xa   : > { %s200_s13 = ssub.s32 %s1237_s30, %s1316_s11  ;;  %p213_p0 = scmp.ne.s32.totalorder %s1233_s29, %s1229_s28 }
   0xb   : > { %p201_p1 = scmp.eq.s32.totalorder %s200_s13, 0  ;;  %p214_p2 = scmp.eq.s32.totalorder %s1312_s9, 1 }
   0xc   : > { %p219_p3 = scmp.ne.s32.totalorder %s1229_s28, %s1225_s27  ;;  %p220_p4 = scmp.eq.s32.totalorder %s935_s10, 1 }
   0xd   : > { %s1327_s14 = scalar_select %p201_p1, %s1233_s29, %s203_s12  }
   0xe   : > { %p1329_p5 = por %p214_p2, %p213_p0  ;;  %p1333_p6 = por %p220_p4, %p219_p3 }
   0xf   : > { %1558 = sst [smem:[#allocation12_spill]] %s1327_s14  ;;  %p936_p7 = scmp.ge.s32.totalorder %s1237_s30, 1 }
  0x10   : > { %p227_p8 = scmp.lt.s32.totalorder %s1237_s30, 3  ;;  %p997_p9 = scmp.eq.s32.totalorder %s1312_s9, 0 }
  0x11   : > { %s1562_s2 = sld [smem:[#allocation14_spill]]  ;;  %s1239_s21 = smov [#allocation5]  }
  0x12   : > { %p1340_p10 = pnand %p936_p7, %p227_p8  ;;  %s255_s22 = sshll.u32 %s1239_s21, 4  ;;  %s256_s22 = int_to_ptr.vmem [resolvable:$true] %s255_s22 }
  0x13   : > { %s1563_s1 = sld [smem:[#allocation13_spill]]  ;;  %s1240_s10 = smov [#allocation2]  }
  0x14   : > { %p983_p11 = pneg %p1340_p10  ;;  %s240_s12 = sshll.u32 %s1240_s10, 4  ;;  %s241_s12 = int_to_ptr.vmem [resolvable:$true] %s240_s12 }
  0x15   : > { %s1241_s13 = smov 256   ;;  %s1242_s18 = smov 16  }
  0x16   : > { %p1354_p12 = pnand %p997_p9, %p983_p11  ;;  %s264_s23 = sshll.u32 %s1550_s3, 4  ;;  %s265_s23 = int_to_ptr.hbm [resolvable:$true] %s264_s23 }
  0x17   : > { %s253_s20 = sshll.u32 %s1562_s2, 4  ;;  %s1243_s24 = smov [#allocation7]   ;;  %s254_s20 = int_to_ptr.hbm [resolvable:$true] %s253_s20 }
  0x18   : > { %989 = dma.hbm_to_vmem [thread:$0]  (!%p1354_p12), %s254_s20, 32, %s256_s22, [#allocation6]  }
  0x19   : > { %s238_s25 = sshll.u32 %s1563_s1, 4  ;;  %s266_s1 = sshll.u32 %s1243_s24, 4  ;;  %s239_s25 = int_to_ptr.hbm [resolvable:$true] %s238_s25  ;;  %s267_s1 = int_to_ptr.vmem [resolvable:$true] %s266_s1 }
  0x1a   : > { %986 = dma.hbm_to_vmem [thread:$0]  (!%p1354_p12), %s239_s25, 1024, %s241_s12, [#allocation3], %s1241_s13, %s1241_s13, %s1242_s18  }
  0x1b   : > { %s1244_s2 = smov 128   ;;  %s1245_s14 = smov 8  }
  0x1c   : > { %992 = dma.hbm_to_vmem [thread:$0]  (!%p1354_p12), %s265_s23, 2048, %s267_s1, [#allocation6], %s1244_s2, %s1244_s2, %s1245_s14  }
  0x1d   : > { %303 = sbr.rel (%p1340_p10) target bundleno = 695 (0x2b7), region = 52 }
  0x22   : > { %1212 = dma.done.wait (%p997_p9), [#allocation3], 1024  }
  0x23   : > { %1214 = vsyncadd (%p997_p9), [#allocation3], 4294966272 }
  0x24   : > { %1216 = dma.done.wait (%p997_p9), [#allocation6], 2080  }
  0x25   : > { %1218 = vsyncadd (%p997_p9), [#allocation6], 4294965216  ;;  %s1378_s20 = sshll.u32 %s1312_s9, 3  ;;  %v369_v0 = vld [vmem:[#allocation2 + $0x38] sm:$0xff]  ;;  %v367_v1 = vld [vmem:[#allocation2 + $0x28] sm:$0xff]  ;;  %vm376_vm0 = vcmask 261120  }
  0x26   : > { %p349_p13 = scmp.lt.s32.totalorder %s1378_s20, 15  ;;  %454 = vmatpush.msra.mxu1 %v369_v0  ;;  %v365_v2 = vld [vmem:[#allocation2 + $0x18] sm:$0xff]  ;;  %v363_v3 = vld [vmem:[#allocation2 + $0x8] sm:$0xff]  ;;  %v1417_v18 = vld [vmem:[#allocation5] sm:$0x3]  ;;  %vm760_vm1 = vcmask 1041409   ;;  %s840_s9 = scalar_lea.hbm %s1555_s8, %s1378_s20 }
  0x27   : > { %v634_v12 = vld [vmem:[#allocation7 + $0x78] sm:$0xff]  ;;  %v633_v13 = vld [vmem:[#allocation7 + $0x70] sm:$0xff]  ;;  %v632_v14 = vld [vmem:[#allocation7 + $0x68] sm:$0xff]  ;;  %v1420_v20 = vperm.slane %v1417_v18, 1  ;;  %vm762_vm2 = vcmask 1042434   ;;  %vm764_vm3 = vcmask 1043459  }
  0x28   : > { %s350_s1 = scalar_select %p349_p13, %s1378_s20, 15  ;;  %455 = vmatpush.msra.mxu1 %v367_v1  ;;  %635 = vmatpush.msra.mxu2 %v634_v12  ;;  %v631_v15 = vld [vmem:[#allocation7 + $0x60] sm:$0xff]  ;;  %v630_v16 = vld [vmem:[#allocation7 + $0x58] sm:$0xff]  ;;  %v629_v17 = vld [vmem:[#allocation7 + $0x50] sm:$0xff]  ;;  %vm766_vm4 = vcmask 1044484   ;;  %vm768_vm5 = vcmask 1045509  }
  0x29   : > { %v628_v19 = vld [vmem:[#allocation7 + $0x48] sm:$0xff]  ;;  %v627_v21 = vld [vmem:[#allocation7 + $0x40] sm:$0xff]  ;;  %v626_v22 = vld [vmem:[#allocation7 + $0x38] sm:$0xff]  ;;  %vm770_vm6 = vcmask 1046534   ;;  %vm772_vm7 = vcmask 1047559   ;;  %s345_s24 = sand.u32 1, %s1229_s28  }
  0x2a   : > { %s947_s2 = sshll.u32 %s350_s1, 3  ;;  %456 = vmatpush.msra.mxu1 %v365_v2  ;;  %636 = vmatpush.msra.mxu2 %v633_v13  ;;  %v625_v25 = vld [vmem:[#allocation7 + $0x30] sm:$0xff]  ;;  %v624_v27 = vld [vmem:[#allocation7 + $0x28] sm:$0xff]  ;;  %v623_v29 = vld [vmem:[#allocation7 + $0x20] sm:$0xff]  ;;  %s945_s1 = sshll.u32 %s345_s24, 3 }
  0x2b   : > { %s352_s22 = scalar_lea.vmem %s1547_s0, %s947_s2  ;;  %v622_v31 = vld [vmem:[#allocation7 + $0x18] sm:$0xff]  ;;  %v621_v35 = vld [vmem:[#allocation7 + $0x10] sm:$0xff]  ;;  %v620_v39 = vld [vmem:[#allocation7 + $0x8] sm:$0xff]  ;;  %s347_s25 = scalar_lea.vmem [#allocation8], %s945_s1 }
  0x2c   : > { %v1385_v4 = vld [vmem:[%s352_s22] sm:$0xff]  ;;  %457 = vmatpush.msra.mxu1 %v363_v3  ;;  %v1389_v5 = vld [vmem:[%s352_s22 + $0x8] sm:$0xff]  ;;  %v1393_v6 = vld [vmem:[%s352_s22 + $0x10] sm:$0xff]  ;;  %637 = vmatpush.msra.mxu2 %v632_v14  ;;  %s842_s26 = sshll.u32 %s347_s25, 4  ;;  %s844_s10 = sshll.u32 %s840_s9, 4  ;;  %s843_s26 = int_to_ptr.vmem [resolvable:$true] %s842_s26  ;;  %s845_s10 = int_to_ptr.hbm [resolvable:$true] %s844_s10 }
  0x2d   : > { %956 = vmatmul.msk.f32.vlgmr.msra.gmra.mxu1 %vm376_vm0, %v1385_v4  ;;  %v1397_v7 = vld [vmem:[%s352_s22 + $0x18] sm:$0xff]  ;;  %v1401_v8 = vld [vmem:[%s352_s22 + $0x20] sm:$0xff]  ;;  %v1405_v9 = vld [vmem:[%s352_s22 + $0x28] sm:$0xff]  ;;  %s830_s12 = scalar_lea.sflag [#allocation4], %s345_s24  ;;  %s1181_s13 = sshra.s32 %s845_s10, 4  ;;  %s1182_s13 = int_to_ptr.hbm [resolvable:$true] %s1181_s13 }
  0x2e   : > { %v1409_v10 = vld [vmem:[%s352_s22 + $0x30] sm:$0xff]  ;;  %v1413_v11 = vld [vmem:[%s352_s22 + $0x38] sm:$0xff]  ;;  %638 = vmatpush.msra.mxu2 %v631_v15  ;;  %v366_v42 = vld [vmem:[#allocation2 + $0x20] sm:$0xff]  ;;  %s1183_s18 = scalar_lea.hbm %s1182_s13, 8  ;;  %s1187_s21 = scalar_lea.hbm %s1555_s8, 16 }
  0x2f   : > { %v368_v38 = vld [vmem:[#allocation2 + $0x30] sm:$0xff]  ;;  %v619_v43 = vld [vmem:[#allocation7] sm:$0xff]  ;;  %p1184_p0 = scmp.ne.s32.totalorder %s1182_s13, %s1183_s18  ;;  %p1188_p3 = scmp.lt.s32.totalorder %s1182_s13, %s1555_s8 }
  0x30   : > { %639 = vmatpush.msra.mxu2 %v630_v16  ;;  %413 = vmatpush.msra.mxu0 %v368_v38  ;;  %v364_v46 = vld [vmem:[#allocation2 + $0x10] sm:$0xff]  ;;  %v362_v51 = vld [vmem:[#allocation2] sm:$0xff]  ;;  %p1189_p4 = scmp.lt.s32.totalorder %s1187_s21, %s1183_s18 }
  0x31   : > { %p1185_p1 = pnand %p1184_p0, %p1329_p5 }
  0x32   : > { %640 = vmatpush.msra.mxu2 %v629_v17  ;;  %414 = vmatpush.msra.mxu0 %v366_v42  ;;  %p1190_p7 = por %p1189_p4, %p1188_p3 }
  0x33   : > { %p1186_p2 = pneg %p1185_p1 }
  0x34   : > { %641 = vmatpush.msra.mxu2 %v628_v19  ;;  %415 = vmatpush.msra.mxu0 %v364_v46 }
  0x35   : > { %957 = vmatmul.msk.f32.gmra.mxu1 %vm376_vm0, %v1389_v5  ;;  %p1191_p8 = pnand %p1190_p7, %p1186_p2 }
  0x36   : > { %642 = vmatpush.msra.mxu2 %v627_v21  ;;  %416 = vmatpush.msra.mxu0 %v362_v51 }
  0x37   : > { %948 = vmatmul.msk.f32.vlgmr.msra.gmra.mxu0 %vm376_vm0, %v1385_v4 }
  0x38   : > { %643 = vmatpush.msra.mxu2 %v626_v22 }
  0x3a   : > { %644 = vmatpush.msra.mxu2 %v625_v25 }
  0x3c   : > { %645 = vmatpush.msra.mxu2 %v624_v27 }
  0x3d   : > { %958 = vmatmul.msk.f32.gmra.mxu1 %vm376_vm0, %v1393_v6 }
  0x3e   : > { %646 = vmatpush.msra.mxu2 %v623_v29 }
  0x3f   : > { %949 = vmatmul.msk.f32.gmra.mxu0 %vm376_vm0, %v1389_v5 }
  0x40   : > { %647 = vmatpush.msra.mxu2 %v622_v31 }
  0x42   : > { %648 = vmatpush.msra.mxu2 %v621_v35 }
  0x44   : > { %649 = vmatpush.msra.mxu2 %v620_v39 }
  0x45   : > { %959 = vmatmul.msk.f32.gmra.mxu1 %vm376_vm0, %v1397_v7 }
  0x46   : > { %650 = vmatpush.msra.mxu2 %v619_v43 }
  0x47   : > { %950 = vmatmul.msk.f32.gmra.mxu0 %vm376_vm0, %v1393_v6 }
  0x4d   : > { %960 = vmatmul.msk.f32.gmra.mxu1 %vm376_vm0, %v1401_v8 }
  0x4f   : > { %951 = vmatmul.msk.f32.gmra.mxu0 %vm376_vm0, %v1397_v7 }
  0x55   : > { %961 = vmatmul.msk.f32.gmra.mxu1 %vm376_vm0, %v1405_v9 }
  0x57   : > { %952 = vmatmul.msk.f32.gmra.mxu0 %vm376_vm0, %v1401_v8 }
  0x5d   : > { %962 = vmatmul.msk.f32.gmra.mxu1 %vm376_vm0, %v1409_v10 }
  0x5f   : > { %953 = vmatmul.msk.f32.gmra.mxu0 %vm376_vm0, %v1405_v9 }
  0x65   : > { %963 = vmatmul.msk.f32.gmra.mxu1 %vm376_vm0, %v1413_v11 }
  0x67   : > { %954 = vmatmul.msk.f32.gmra.mxu0 %vm376_vm0, %v1409_v10 }
  0x6f   : > { %955 = vmatmul.msk.f32.gmra.mxu0 %vm376_vm0, %v1413_v11 }
  0xaa   : > { %v459_v23 = vpop.f32.mrf.mxu1 }
  0xab   : > { %v460_v24 = vadd.f32 %v459_v23, %v1420_v20 }
  0xad   : > { %v483_v26 = vrot.slane %v460_v24, 4 }
  0xaf   : > { %v484_v28 = vmax.f32 %v460_v24, %v483_v26 }
  0xb1   : > { %v485_v30 = vrot.slane %v484_v28, 2 }
  0xb2   : > { %v462_v32 = vpop.f32.mrf.mxu1 }
  0xb3   : > { %v486_v33 = vmax.f32 %v484_v28, %v485_v30  ;;  %v463_v34 = vadd.f32 %v462_v32, %v1420_v20 }
  0xb5   : > { %v487_v36 = vrot.slane %v486_v33, 1  ;;  %v489_v37 = vrot.slane %v463_v34, 4 }
  0xb7   : > { %v488_v40 = vmax.f32 %v486_v33, %v487_v36  ;;  %v490_v41 = vmax.f32 %v463_v34, %v489_v37 }
  0xb9   : > { %v531_v44 = vsub.f32 %v460_v24, %v488_v40  ;;  %v491_v45 = vrot.slane %v490_v41, 2 }
  0xba   : > { %v465_v47 = vpop.f32.mrf.mxu1 }
  0xbb   : > { %v539_v48 = vmul.f32 1.442695, %v531_v44  ;;  %v492_v49 = vmax.f32 %v490_v41, %v491_v45  ;;  %v466_v50 = vadd.f32 %v465_v47, %v1420_v20 }
  0xbd   : > { %1045 = vpow2.f32 %v539_v48  ;;  %v493_v52 = vrot.slane %v492_v49, 1  ;;  %v495_v53 = vrot.slane %v466_v50, 4 }
  0xbf   : > { %v494_v54 = vmax.f32 %v492_v49, %v493_v52  ;;  %v496_v55 = vmax.f32 %v466_v50, %v495_v53 }
  0xc1   : > { %v532_v56 = vsub.f32 %v463_v34, %v494_v54  ;;  %v497_v57 = vrot.slane %v496_v55, 2 }
  0xc2   : > { %v468_v58 = vpop.f32.mrf.mxu1 }
  0xc3   : > { %v1046_v59 = vpop.eup %1045  ;;  %v541_v60 = vmul.f32 1.442695, %v532_v56  ;;  %v498_v61 = vmax.f32 %v496_v55, %v497_v57  ;;  %v469_v62 = vadd.f32 %v468_v58, %v1420_v20 }
  0xc4   : > { %v555_v63 = vrot.slane %v1046_v59, 4 }
  0xc5   : > { %1047 = vpow2.f32 %v541_v60  ;;  %v499_v0 = vrot.slane %v498_v61, 1  ;;  %v501_v1 = vrot.slane %v469_v62, 4 }
  0xc6   : > { %v556_v2 = vadd.f32 %v1046_v59, %v555_v63 }
  0xc7   : > { %v500_v3 = vmax.f32 %v498_v61, %v499_v0  ;;  %v502_v4 = vmax.f32 %v469_v62, %v501_v1 }
  0xc8   : > { %v557_v12 = vrot.slane %v556_v2, 2 }
  0xc9   : > { %v533_v13 = vsub.f32 %v466_v50, %v500_v3  ;;  %v503_v14 = vrot.slane %v502_v4, 2 }
  0xca   : > { %v471_v15 = vpop.f32.mrf.mxu1  ;;  %v558_v16 = vadd.f32 %v557_v12, %v556_v2 }
  0xcb   : > { %v1048_v17 = vpop.eup %1047  ;;  %v543_v19 = vmul.f32 1.442695, %v533_v13  ;;  %v504_v21 = vmax.f32 %v502_v4, %v503_v14  ;;  %v472_v22 = vadd.f32 %v471_v15, %v1420_v20 }
  0xcc   : > { %v559_v23 = vrot.slane %v558_v16, 1  ;;  %v561_v24 = vrot.slane %v1048_v17, 4 }
  0xcd   : > { %1049 = vpow2.f32 %v543_v19  ;;  %v505_v25 = vrot.slane %v504_v21, 1  ;;  %v507_v26 = vrot.slane %v472_v22, 4 }
  0xce   : > { %v560_v5 = vadd.f32 %v559_v23, %v558_v16  ;;  %v562_v27 = vadd.f32 %v1048_v17, %v561_v24 }
  0xcf   : > { %v506_v28 = vmax.f32 %v504_v21, %v505_v25  ;;  %v508_v29 = vmax.f32 %v472_v22, %v507_v26 }
  0xd0   : > { %1051 = vrcp.f32 %v560_v5  ;;  %v563_v30 = vrot.slane %v562_v27, 2 }
  0xd1   : > { %v534_v31 = vsub.f32 %v469_v62, %v506_v28  ;;  %v509_v32 = vrot.slane %v508_v29, 2 }
  0xd2   : > { %v474_v33 = vpop.f32.mrf.mxu1  ;;  %v564_v34 = vadd.f32 %v563_v30, %v562_v27 }
  0xd3   : > { %v1050_v35 = vpop.eup %1049  ;;  %v545_v36 = vmul.f32 1.442695, %v534_v31  ;;  %v510_v37 = vmax.f32 %v508_v29, %v509_v32  ;;  %v475_v38 = vadd.f32 %v474_v33, %v1420_v20 }
  0xd4   : > { %v565_v39 = vrot.slane %v564_v34, 1  ;;  %v567_v40 = vrot.slane %v1050_v35, 4 }
  0xd5   : > { %1053 = vpow2.f32 %v545_v36  ;;  %v511_v41 = vrot.slane %v510_v37, 1  ;;  %v513_v6 = vrot.slane %v475_v38, 4 }
  0xd6   : > { %v1052_v42 = vpop.eup %1051  ;;  %v566_v43 = vadd.f32 %v565_v39, %v564_v34  ;;  %v568_v44 = vadd.f32 %v1050_v35, %v567_v40 }
  0xd7   : > { %v512_v45 = vmax.f32 %v510_v37, %v511_v41  ;;  %v514_v46 = vmax.f32 %v475_v38, %v513_v6  ;;  %v611_v47 = vmul.f32 %v1052_v42, %v1046_v59 }
  0xd8   : > { %1055 = vrcp.f32 %v566_v43  ;;  %v569_v48 = vrot.slane %v568_v44, 2 }
  0xd9   : > { %v535_v49 = vsub.f32 %v472_v22, %v512_v45  ;;  %v515_v50 = vrot.slane %v514_v46, 2  ;;  %651 = vmatmul.f32.vlgmr.msra.gmra.mxu2 %v611_v47 }
  0xda   : > { %v477_v51 = vpop.f32.mrf.mxu1  ;;  %v570_v52 = vadd.f32 %v569_v48, %v568_v44 }
  0xdb   : > { %v1054_v53 = vpop.eup %1053  ;;  %v547_v54 = vmul.f32 1.442695, %v535_v49  ;;  %v516_v55 = vmax.f32 %v514_v46, %v515_v50  ;;  %v478_v56 = vadd.f32 %v477_v51, %v1420_v20 }
  0xdc   : > { %v571_v57 = vrot.slane %v570_v52, 1  ;;  %v573_v7 = vrot.slane %v1054_v53, 4 }
  0xdd   : > { %1057 = vpow2.f32 %v547_v54  ;;  %v517_v58 = vrot.slane %v516_v55, 1  ;;  %v519_v60 = vrot.slane %v478_v56, 4 }
  0xde   : > { %v1056_v59 = vpop.eup %1055  ;;  %v572_v61 = vadd.f32 %v571_v57, %v570_v52  ;;  %v574_v62 = vadd.f32 %v1054_v53, %v573_v7 }
  0xdf   : > { %v518_v63 = vmax.f32 %v516_v55, %v517_v58  ;;  %v520_v0 = vmax.f32 %v478_v56, %v519_v60  ;;  %v612_v1 = vmul.f32 %v1056_v59, %v1048_v17 }
  0xe0   : > { %1059 = vrcp.f32 %v572_v61  ;;  %v575_v2 = vrot.slane %v574_v62, 2 }
  0xe1   : > { %v536_v3 = vsub.f32 %v475_v38, %v518_v63  ;;  %v521_v4 = vrot.slane %v520_v0, 2  ;;  %654 = vmatmul.f32.gmra.mxu2 %v612_v1  ;;  %v418_v1 = vpop.f32.mrf.mxu0 }
  0xe2   : > { %v480_v12 = vpop.f32.mrf.mxu1  ;;  %v576_v13 = vadd.f32 %v575_v2, %v574_v62 }
  0xe3   : > { %v1058_v14 = vpop.eup %1057  ;;  %v549_v15 = vmul.f32 1.442695, %v536_v3  ;;  %v522_v16 = vmax.f32 %v520_v0, %v521_v4  ;;  %v481_v19 = vadd.f32 %v480_v12, %v1420_v20 }
  0xe4   : > { %v577_v21 = vrot.slane %v576_v13, 1  ;;  %v579_v8 = vrot.slane %v1058_v14, 4 }
  0xe5   : > { %1061 = vpow2.f32 %v549_v15  ;;  %v523_v22 = vrot.slane %v522_v16, 1  ;;  %v525_v23 = vrot.slane %v481_v19, 4  ;;  %v746_v15 = vld [vmem:[%s1551_s4 + $0x70] sm:$0xff] }
  0xe6   : > { %v1060_v17 = vpop.eup %1059  ;;  %v578_v24 = vadd.f32 %v577_v21, %v576_v13  ;;  %v580_v25 = vadd.f32 %v1058_v14, %v579_v8  ;;  %v747_v13 = vld [vmem:[%s1551_s4 + $0x78] sm:$0xff] }
  0xe7   : > { %v524_v26 = vmax.f32 %v522_v16, %v523_v22  ;;  %v526_v5 = vmax.f32 %v481_v19, %v525_v23  ;;  %v613_v27 = vmul.f32 %v1060_v17, %v1050_v35  ;;  %775 = vmatpush.msra.mxu3 %v747_v13  ;;  %v745_v16 = vld [vmem:[%s1551_s4 + $0x68] sm:$0xff]  ;;  %v743_v8 = vld [vmem:[%s1551_s4 + $0x58] sm:$0xff]  ;;  %v742_v22 = vld [vmem:[%s1551_s4 + $0x50] sm:$0xff] }
  0xe8   : > { %1063 = vrcp.f32 %v578_v24  ;;  %v581_v28 = vrot.slane %v580_v25, 2  ;;  %v741_v17 = vld [vmem:[%s1551_s4 + $0x48] sm:$0xff]  ;;  %v740_v24 = vld [vmem:[%s1551_s4 + $0x40] sm:$0xff] }
  0xe9   : > { %v537_v29 = vsub.f32 %v478_v56, %v524_v26  ;;  %v527_v30 = vrot.slane %v526_v5, 2  ;;  %657 = vmatmul.f32.gmra.mxu2 %v613_v27  ;;  %v421_v2 = vpop.f32.mrf.mxu0  ;;  %776 = vmatpush.msra.mxu3 %v746_v15  ;;  %v739_v26 = vld [vmem:[%s1551_s4 + $0x38] sm:$0xff]  ;;  %v737_v27 = vld [vmem:[%s1551_s4 + $0x28] sm:$0xff] }
  0xea   : > { %v582_v20 = vadd.f32 %v581_v28, %v580_v25 }
  0xeb   : > { %v1062_v31 = vpop.eup %1061  ;;  %v551_v32 = vmul.f32 1.442695, %v537_v29  ;;  %v528_v33 = vmax.f32 %v526_v5, %v527_v30  ;;  %777 = vmatpush.msra.mxu3 %v745_v16  ;;  %v738_v5 = vld [vmem:[%s1551_s4 + $0x30] sm:$0xff]  ;;  %v736_v29 = vld [vmem:[%s1551_s4 + $0x20] sm:$0xff]  ;;  %v372_v30 = vperm.slane %v1417_v18, 0  ;;  %v733_v18 = vld [vmem:[%s1551_s4 + $0x8] sm:$0xff] }
  0xec   : > { %v583_v34 = vrot.slane %v582_v20, 1  ;;  %v585_v36 = vrot.slane %v1062_v31, 4 }
  0xed   : > { %1065 = vpow2.f32 %v551_v32  ;;  %v529_v37 = vrot.slane %v528_v33, 1  ;;  %v422_v32 = vadd.f32 %v421_v2, %v372_v30 }
  0xee   : > { %v1064_v9 = vpop.eup %1063  ;;  %v584_v38 = vadd.f32 %v583_v34, %v582_v20  ;;  %v586_v39 = vadd.f32 %v1062_v31, %v585_v36  ;;  %v734_v34 = vld [vmem:[%s1551_s4 + $0x10] sm:$0xff]  ;;  %v419_v36 = vadd.f32 %v418_v1, %v372_v30 }
  0xef   : > { %v530_v35 = vmax.f32 %v528_v33, %v529_v37  ;;  %v614_v40 = vmul.f32 %v1064_v9, %v1054_v53 }
  0xf0   : > { %1067 = vrcp.f32 %v584_v38  ;;  %v587_v41 = vrot.slane %v586_v39, 2  ;;  %v732_v38 = vld [vmem:[%s1551_s4] sm:$0xff] }
  0xf1   : > { %v538_v6 = vsub.f32 %v481_v19, %v530_v35  ;;  %660 = vmatmul.f32.gmra.mxu2 %v614_v40  ;;  %v424_v4 = vpop.f32.mrf.mxu0  ;;  %v744_v19 = vld [vmem:[%s1551_s4 + $0x60] sm:$0xff] }
  0xf2   : > { %v588_v42 = vadd.f32 %v587_v41, %v586_v39  ;;  %778 = vmatpush.msra.mxu3 %v744_v19  ;;  %v425_v33 = vadd.f32 %v424_v4, %v372_v30 }
  0xf3   : > { %v1066_v43 = vpop.eup %1065  ;;  %v553_v44 = vmul.f32 1.442695, %v538_v6 }
  0xf4   : > { %v589_v45 = vrot.slane %v588_v42, 1  ;;  %v591_v46 = vrot.slane %v1066_v43, 4  ;;  %779 = vmatpush.msra.mxu3 %v743_v8 }
  0xf5   : > { %1069 = vpow2.f32 %v553_v44 }
  0xf6   : > { %v1068_v47 = vpop.eup %1067  ;;  %v590_v10 = vadd.f32 %v589_v45, %v588_v42  ;;  %v592_v48 = vadd.f32 %v1066_v43, %v591_v46  ;;  %780 = vmatpush.msra.mxu3 %v742_v22  ;;  %v798_v45 = vld [vmem:[%s1553_s6 + $0x18] sm:$0xff]  ;;  %v797_v46 = vld [vmem:[%s1553_s6 + $0x10] sm:$0xff] }
  0xf7   : > { %v615_v49 = vmul.f32 %v1068_v47, %v1058_v14 }
  0xf8   : > { %1071 = vrcp.f32 %v590_v10  ;;  %v593_v50 = vrot.slane %v592_v48, 2  ;;  %781 = vmatpush.msra.mxu3 %v741_v17 }
  0xf9   : > { %663 = vmatmul.f32.gmra.mxu2 %v615_v49  ;;  %v427_v14 = vpop.f32.mrf.mxu0  ;;  %v796_v49 = vld [vmem:[%s1553_s6 + $0x8] sm:$0xff] }
  0xfa   : > { %v594_v51 = vadd.f32 %v593_v50, %v592_v48  ;;  %782 = vmatpush.msra.mxu3 %v740_v24  ;;  %v428_v37 = vadd.f32 %v427_v14, %v372_v30 }
  0xfb   : > { %v1070_v52 = vpop.eup %1069 }
  0xfc   : > { %v595_v53 = vrot.slane %v594_v51, 1  ;;  %v597_v54 = vrot.slane %v1070_v52, 4  ;;  %783 = vmatpush.msra.mxu3 %v739_v26 }
  0xfe   : > { %v1072_v55 = vpop.eup %1071  ;;  %v596_v56 = vadd.f32 %v595_v53, %v594_v51  ;;  %v598_v57 = vadd.f32 %v1070_v52, %v597_v54  ;;  %784 = vmatpush.msra.mxu3 %v738_v5 }
  0xff   : > { %v616_v7 = vmul.f32 %v1072_v55, %v1062_v31  ;;  %v735_v31 = vld [vmem:[%s1551_s4 + $0x18] sm:$0xff] }
 0x100   : > { %1073 = vrcp.f32 %v596_v56  ;;  %v599_v58 = vrot.slane %v598_v57, 2  ;;  %785 = vmatpush.msra.mxu3 %v737_v27 }
 0x101   : > { %666 = vmatmul.f32.gmra.mxu2 %v616_v7  ;;  %v430_v23 = vpop.f32.mrf.mxu0 }
 0x102   : > { %v600_v60 = vadd.f32 %v599_v58, %v598_v57  ;;  %786 = vmatpush.msra.mxu3 %v736_v29  ;;  %v431_v9 = vadd.f32 %v430_v23, %v372_v30 }
 0x104   : > { %v601_v11 = vrot.slane %v600_v60, 1  ;;  %787 = vmatpush.msra.mxu3 %v735_v31 }
 0x106   : > { %v1074_v59 = vpop.eup %1073  ;;  %v602_v61 = vadd.f32 %v601_v11, %v600_v60  ;;  %788 = vmatpush.msra.mxu3 %v734_v34 }
 0x107   : > { %v617_v62 = vmul.f32 %v1074_v59, %v1066_v43 }
 0x108   : > { %1075 = vrcp.f32 %v602_v61  ;;  %789 = vmatpush.msra.mxu3 %v733_v18 }
 0x109   : > { %669 = vmatmul.f32.gmra.mxu2 %v617_v62  ;;  %v433_v28 = vpop.f32.mrf.mxu0 }
 0x10a   : > { %v434_v35 = vadd.f32 %v433_v28, %v372_v30  ;;  %790 = vmatpush.msra.mxu3 %v732_v38 }
 0x10c   : > { %818 = vmatpush.msrb.mxu3 %v798_v45 }
 0x10e   : > { %v1076_v63 = vpop.eup %1075  ;;  %819 = vmatpush.msrb.mxu3 %v797_v46 }
 0x10f   : > { %v618_v0 = vmul.f32 %v1076_v63, %v1070_v52 }
 0x110   : > { %820 = vmatpush.msrb.mxu3 %v796_v49 }
 0x111   : > { %672 = vmatmul.f32.gmra.mxu2 %v618_v0  ;;  %v436_v44 = vpop.f32.mrf.mxu0 }
 0x112   : > { %v437_v55 = vadd.f32 %v436_v44, %v372_v30 }
 0x119   : > { %v439_v63 = vpop.f32.mrf.mxu0 }
 0x11a   : > { %v440_v14 = vadd.f32 %v439_v63, %v372_v30 }
 0x15c   : > { %v652_v3 = vpop.f32.mrf.mxu2 }
 0x15d   : > { %v676_v41 = vmul.f32 %v652_v3, %v419_v36 }
 0x15f   : > { %v684_v50 = vrot.slane %v676_v41, 4 }
 0x161   : > { %v685_v57 = vadd.f32 %v684_v50, %v676_v41  ;;  %v1044_v50 = vld [vmem:[%s1554_s7] ss:$0 sm:$0xff] }
 0x163   : > { %v686_v0 = vrot.slane %v685_v57, 2 }
 0x164   : > { %v655_v12 = vpop.f32.mrf.mxu2 }
 0x165   : > { %v677_v39 = vmul.f32 %v655_v12, %v422_v32  ;;  %v687_v16 = vadd.f32 %v686_v0, %v685_v57 }
 0x167   : > { %v690_v47 = vrot.slane %v677_v39, 4  ;;  %v688_v5 = vrot.slane %v687_v16, 1 }
 0x169   : > { %v691_v53 = vadd.f32 %v690_v47, %v677_v39  ;;  %v689_v34 = vadd.f32 %v688_v5, %v687_v16  ;;  %v795_v47 = vld [vmem:[%s1553_s6] sm:$0xff] }
 0x16a   : > { %821 = vmatpush.msrb.mxu3 %v795_v47 }
 0x16b   : > { %v692_v11 = vrot.slane %v691_v53, 2 }
 0x16c   : > { %v658_v21 = vpop.f32.mrf.mxu2 }
 0x16d   : > { %v678_v40 = vmul.f32 %v658_v21, %v425_v33  ;;  %v693_v4 = vadd.f32 %v692_v11, %v691_v53 }
 0x16f   : > { %v696_v48 = vrot.slane %v678_v40, 4  ;;  %v694_v23 = vrot.slane %v693_v4, 1 }
 0x171   : > { %v697_v56 = vadd.f32 %v696_v48, %v678_v40 }
 0x173   : > { %v698_v62 = vrot.slane %v697_v56, 2 }
 0x174   : > { %v661_v25 = vpop.f32.mrf.mxu2 }
 0x175   : > { %v679_v6 = vmul.f32 %v661_v25, %v428_v37  ;;  %v699_v15 = vadd.f32 %v698_v62, %v697_v56 }
 0x177   : > { %v702_v51 = vrot.slane %v679_v6, 4  ;;  %v700_v25 = vrot.slane %v699_v15, 1 }
 0x179   : > { %v703_v7 = vadd.f32 %v702_v51, %v679_v6  ;;  %v701_v30 = vadd.f32 %v700_v25, %v699_v15 }
 0x17b   : > { %v704_v1 = vrot.slane %v703_v7, 2 }
 0x17c   : > { %v664_v20 = vpop.f32.mrf.mxu2 }
 0x17d   : > { %v680_v42 = vmul.f32 %v664_v20, %v431_v9  ;;  %v705_v19 = vadd.f32 %v704_v1, %v703_v7  ;;  %v695_v20 = vadd.f32 %v694_v23, %v693_v4 }
 0x17f   : > { %v708_v52 = vrot.slane %v680_v42, 4  ;;  %v706_v27 = vrot.slane %v705_v19, 1  ;;  %v761_v9 = vsel %vm760_vm1, %v695_v20, %v689_v34 }
 0x181   : > { %v709_v58 = vadd.f32 %v708_v52, %v680_v42  ;;  %v707_v36 = vadd.f32 %v706_v27, %v705_v19 }
 0x183   : > { %v710_v3 = vrot.slane %v709_v58, 2 }
 0x184   : > { %v667_v43 = vpop.f32.mrf.mxu2 }
 0x185   : > { %v681_v10 = vmul.f32 %v667_v43, %v434_v35  ;;  %v711_v8 = vadd.f32 %v710_v3, %v709_v58  ;;  %v763_v35 = vsel %vm762_vm2, %v701_v30, %v761_v9 }
 0x186   : > { %v765_v6 = vsel %vm764_vm3, %v707_v36, %v763_v35 }
 0x187   : > { %v714_v54 = vrot.slane %v681_v10, 4  ;;  %v712_v29 = vrot.slane %v711_v8, 1 }
 0x189   : > { %v715_v59 = vadd.f32 %v714_v54, %v681_v10  ;;  %v713_v18 = vadd.f32 %v712_v29, %v711_v8  ;;  %v1043_v10 = vld [vmem:[%s1552_s5] ss:$0 sm:$0xff] }
 0x18b   : > { %v716_v12 = vrot.slane %v715_v59, 2  ;;  %v767_v42 = vsel %vm766_vm4, %v713_v18, %v765_v6 }
 0x18c   : > { %v670_v60 = vpop.f32.mrf.mxu2 }
 0x18d   : > { %v682_v61 = vmul.f32 %v670_v60, %v437_v55  ;;  %v717_v17 = vadd.f32 %v716_v12, %v715_v59 }
 0x18f   : > { %v720_v2 = vrot.slane %v682_v61, 4  ;;  %v718_v31 = vrot.slane %v717_v17, 1 }
 0x191   : > { %v721_v13 = vadd.f32 %v720_v2, %v682_v61  ;;  %v719_v38 = vadd.f32 %v718_v31, %v717_v17 }
 0x193   : > { %v722_v21 = vrot.slane %v721_v13, 2  ;;  %v769_v44 = vsel %vm768_vm5, %v719_v38, %v767_v42 }
 0x194   : > { %v673_v22 = vpop.f32.mrf.mxu2 }
 0x195   : > { %v683_v24 = vmul.f32 %v673_v22, %v440_v14  ;;  %v723_v26 = vadd.f32 %v722_v21, %v721_v13 }
 0x197   : > { %v726_v28 = vrot.slane %v683_v24, 4  ;;  %v724_v33 = vrot.slane %v723_v26, 1 }
 0x199   : > { %v727_v32 = vadd.f32 %v726_v28, %v683_v24  ;;  %v725_v40 = vadd.f32 %v724_v33, %v723_v26 }
 0x19b   : > { %v728_v37 = vrot.slane %v727_v32, 2  ;;  %v771_v45 = vsel %vm770_vm6, %v725_v40, %v769_v44 }
 0x19d   : > { %v729_v39 = vadd.f32 %v728_v37, %v727_v32 }
 0x19f   : > { %v730_v41 = vrot.slane %v729_v39, 1 }
 0x1a1   : > { %v731_v43 = vadd.f32 %v730_v41, %v729_v39 }
 0x1a3   : > { %v773_v46 = vsel %vm772_vm7, %v731_v43, %v771_v45 }
 0x1a4   : > { %791 = vmatmul.f32.vlgmr.msra.gmra.mxu3 %v773_v46 }
 0x227   : > { %v792_v48 = vpop.f32.mrf.mxu3 }
 0x228   : > { %v793_v49 = vadd.f32 %v1043_v10, %v792_v48 }
 0x22a   : > { %964 = vmatmul.msk.f32.vlgmr.msrb.gmra.mxu3 %vm376_vm0, %v793_v49 }
 0x2ad   : > { %v823_v51 = vpop.f32.mrf.mxu3 }
 0x2ae   : > { %v824_v52 = vadd.f32 %v1044_v50, %v823_v51 }
 0x2b0   : > { %v826_v53 = vmax.f32 %v824_v52, 0.0 }
 0x2b2   : > { %v827_v54 = vadd.f32 %v826_v53, %v793_v49 }
 0x2b4   : > { %828 = vst.msk [vmem:[%s347_s25] sm:$0xff] %vm376_vm0, %v827_v54 }
 0x2b5   : > { %1194 = shalt.err (!%p1191_p8)
}
 0x2b6   : > { %981 = dma.vmem_to_hbm [thread:$0]  (%p1329_p5), %s843_s26, 128, %s845_s10, %s830_s12  }
 0x2b7 PF: > { %p1003_p9 = scmp.ge.s32.totalorder %s1237_s30, 2  ;;  %s856_s24 = sand.u32 1, %s1225_s27  }
 0x2b8   : > { %s857_s2 = scalar_lea.sflag [#allocation4], %s856_s24 }
 0x2b9   : > { %p994_p10 = pnand %p1003_p9, %p1333_p6 }
 0x2bb   : > { %p995_p11 = pneg %p994_p10 }
 0x2bd   : > { %1220 = dma.done.wait (%p995_p11), %s857_s2, 128  }
 0x2be   : > { %1222 = vsyncadd (%p995_p11), %s857_s2, 4294967168  ;;  %s1565_s14 = sld [smem:[#allocation12_spill]]  ;;  %p20_p12 = scmp.ge.s32.totalorder %s1316_s11, 4  }
 0x2bf   : > { %s1566_s27 = smov %s1229_s28  ;;  %s1567_s28 = smov %s1233_s29 }
 0x2c0   : > { %s1569_s30 = smov %s1316_s11  ;;  %22 = sbr.rel (!%p20_p12) target bundleno = 8 (0x8), region = 100 }
 0x2c4   : > { %s1568_s29 = smov %s1565_s14 }
 0x2c5   :  { %863 = vsyncpa [#allocation3], 1 }
 0x2c6   :  { %865 = vsyncpa [#allocation3 + $0x1], 1 }
 0x2c7   :  { %866 = vsyncpa [#allocation6], 1 }
 0x2c8   :  { %867 = vsyncpa [#allocation4], 1 }
 0x2c9   :  { %869 = vsyncpa [#allocation4 + $0x1], 1 }

</bundles_post_ra>
